<compile_context>
chip_gen: v6e
topology: v6e:2x2x1
jax: 0.10.0
libtpu: 0.0.40
codegen_flags: <defaults>
</compile_context>

<pallas_src>
import functools

import jax
import jax.numpy as jnp
from jax.experimental import pallas as pl
from jax.experimental.pallas import tpu as pltpu

BN_EPS = 1e-5


def _round_up(x, m):
    return (x + m - 1) // m * m


def _tpu_vmem_bytes():
    try:
        return int(pltpu.get_tpu_info().vmem_capacity_bytes)
    except Exception:
        return 64 * 1024 * 1024          # conservative default (v7x physical)


_VMEM_PHYS = _tpu_vmem_bytes()
# Budget for the double-buffered per-tile working set; the pallas_call scoped
# VMEM limit gets extra headroom for Mosaic scratch but stays below physical.
_VMEM_BUDGET = min(int(_VMEM_PHYS * 0.55), 96 * 1024 * 1024)
_VMEM_LIMIT = max(32 * 1024 * 1024,
                  min(_VMEM_PHYS - (4 << 20), _VMEM_BUDGET + (16 << 20)))


def _pick_tile(mp, h_halo, cin, cout):
    """Largest lane-tile T (multiple of h_halo) whose double-buffered working
    set fits the per-generation VMEM budget."""
    # Bytes/lane (f32): double-buffered x/mask/y blocks + in-kernel temporaries
    # (concat window, stacked 9-tap operand, matmul acc, masked copy).
    per_lane = 4 * (2 * (cin + 1 + cout) + cin + 2 * 9 * cin + 2 * cout)
    fixed = 4 * (2 * cin * h_halo + 2 * cout * 9 * cin) + (4 << 20)
    cap = _round_up(mp, h_halo)
    for cand in (8192, 4096, 2048, 1024, 512, 256, 128):
        t = _round_up(cand, h_halo)
        if t <= cap and fixed + per_lane * t <= _VMEM_BUDGET:
            return t
    return h_halo


# ----------------------------------------------------------------------------
# Fused 3x3 shift-conv (single deep MXU matmul) + per-channel BN statistics
# ----------------------------------------------------------------------------
def _conv_stats_kernel(x_lo_ref, x_halo_ref, w_ref, mask_ref, y_ref, stats_ref,
                       *, tap_offsets, off):
    # x_lo_ref  : (Cin, T)       current tile of padded, flattened input
    # x_halo_ref: (Cin, H_halo)  narrow right-halo (next 2*(Wp+1) lanes, padded)
    # w_ref     : (Cout, 9*Cin)  weights with the 9 taps folded into K
    # mask_ref  : (1, T)         1.0 where the flat position is a real output
    # y_ref     : (Cout, T)      raw conv output tile (lane-dense)
    # stats_ref : (1, Cout, 2)   per-core resident accumulator [sum, sum(y^2)]
    t_m = y_ref.shape[1]
    xx = jnp.concatenate([x_lo_ref[...], x_halo_ref[...]], axis=1)

    # im2col restricted to this tile: stack the 9 statically shifted windows
    # along the contraction axis -> one (9*Cin, T) operand, one MXU matmul
    # with K = 9*Cin (accumulation happens inside the systolic array).
    # TODO(synk): the 9 lane-unaligned slices are VMEM copies; a pltpu.roll
    # based shift chain would move that work onto the XLU if the vld/vst
    # slots ever become the binding resource (most likely on v5e).
    patch = jnp.concatenate(
        [jax.lax.slice_in_dim(xx, off + d, off + d + t_m, axis=1)
         for d in tap_offsets], axis=0)                            # (9*Cin, T)
    acc = jnp.dot(w_ref[...], patch, preferred_element_type=jnp.float32)
    y_ref[...] = acc                                               # (Cout, T)

    @pl.when(pl.program_id(1) == 0)
    def _init():
        stats_ref[...] = jnp.zeros_like(stats_ref)

    masked = acc * mask_ref[...]                     # zero out pad positions
    tile_sum = jnp.sum(masked, axis=1, keepdims=True)              # (Cout, 1)
    tile_ssq = jnp.sum(masked * acc, axis=1, keepdims=True)        # (Cout, 1)
    stats_ref[...] += jnp.concatenate([tile_sum, tile_ssq], axis=1)[None]


@functools.partial(jax.jit, static_argnames=("stride", "tile_lanes"))
def conv_bn_relu(x_nchw, weight, bias, gamma, beta, stride=1, tile_lanes=None):
    """x:(N,Cin,H,W), weight:(Cout,Cin,3,3) -> (N,Cout,Ho,Wo).

    `bias` is accepted for interface parity with nn.Conv2d but is unused:
    train-mode BatchNorm subtracts the batch mean, which cancels it exactly.
    """
    del bias
    f32 = jnp.float32
    N, Cin, H, W = x_nchw.shape
    Cout = weight.shape[0]
    Hp, Wp = H + 2, W + 2
    Ho = (H - 1) // stride + 1
    Wo = (W - 1) // stride + 1
    Mp = N * Hp * Wp                          # flattened padded spatial grid
    off = Wp + 1                              # worst-case negative tap shift
    h_halo = _round_up(2 * (Wp + 1), 128)     # right-halo lanes actually needed

    if tile_lanes is None:
        T = _pick_tile(Mp, h_halo, Cin, Cout)
    else:
        T = _round_up(max(int(tile_lanes), h_halo), h_halo)
    G = pl.cdiv(Mp, T)
    nsplit = 2 if G >= 2 else 1               # "parallel" axis -> v7x megacore
    Gp = pl.cdiv(G, nsplit)
    Mp_pad = nsplit * Gp * T
    Lx = Mp_pad + T                           # multiple of both T and h_halo
    R = T // h_halo                           # halo block-index stride

    # --- channel-major, spatially zero-padded, flattened input --------------
    x_cf = jnp.transpose(x_nchw.astype(f32), (1, 0, 2, 3))       # (Cin,N,H,W)
    x_pad = jnp.pad(x_cf, ((0, 0), (0, 0), (1, 1), (1, 1)))      # (Cin,N,Hp,Wp)
    x_flat = jnp.pad(x_pad.reshape(Cin, Mp),
                     ((0, 0), (off, Lx - off - Mp)))             # (Cin, Lx)

    # --- weights: 9 taps folded into the contraction axis -------------------
    # (Cout,Cin,kh,kw) -> (Cout,kh,kw,Cin) -> (Cout, 9*Cin), tap-major / Cin-minor.
    w_stack = jnp.transpose(weight.astype(f32), (0, 2, 3, 1)).reshape(Cout, 9 * Cin)
    tap_offsets = tuple((kh - 1) * Wp + (kw - 1)
                        for kh in range(3) for kw in range(3))

    # --- validity mask over the padded flat grid (also encodes the stride) --
    hp = jnp.arange(Hp)
    wp = jnp.arange(Wp)
    vh = (hp >= 1) & (hp <= H) & (((hp - 1) % stride) == 0)
    vw = (wp >= 1) & (wp <= W) & (((wp - 1) % stride) == 0)
    m2 = (vh[:, None] & vw[None, :]).astype(f32)                  # (Hp, Wp)
    mask = jnp.broadcast_to(m2[None], (N, Hp, Wp)).reshape(1, Mp)
    mask = jnp.pad(mask, ((0, 0), (0, Mp_pad - Mp)))              # (1, Mp_pad)
    n_valid = float(N * Ho * Wo)

    # --- single Pallas phase: fused conv + per-channel sum / sum-of-squares --
    y_flat, stats = pl.pallas_call(
        functools.partial(_conv_stats_kernel,
                          tap_offsets=tap_offsets, off=off),
        grid=(nsplit, Gp),
        in_specs=[
            pl.BlockSpec((Cin, T), lambda c, i: (0, c * Gp + i)),        # x tile
            pl.BlockSpec((Cin, h_halo),
                         lambda c, i: (0, (c * Gp + i + 1) * R)),        # narrow halo
            pl.BlockSpec((Cout, 9 * Cin), lambda c, i: (0, 0)),          # weights
            pl.BlockSpec((1, T), lambda c, i: (0, c * Gp + i)),          # mask
        ],
        out_specs=[
            pl.BlockSpec((Cout, T), lambda c, i: (0, c * Gp + i)),       # conv out
            pl.BlockSpec((1, Cout, 2), lambda c, i: (c, 0, 0)),          # per-core stats
        ],
        out_shape=[
            jax.ShapeDtypeStruct((Cout, Mp_pad), f32),
            jax.ShapeDtypeStruct((nsplit, Cout, 2), f32),
        ],
        compiler_params=pltpu.CompilerParams(
            dimension_semantics=("parallel", "arbitrary"),
            vmem_limit_bytes=_VMEM_LIMIT),
    )(x_flat, x_flat, w_stack, mask)

    # --- BN (batch stats, biased var) + ReLU + strided extraction in XLA ----
    s = jnp.sum(stats, axis=0)                                    # (Cout, 2)
    mean = s[:, 0] / n_valid
    # TODO(synk): single-pass E[y^2]-E[y]^2 loses precision when |mean| >> std
    # (trained weights); switch to a Welford-style merge if that regime matters.
    var = jnp.maximum(s[:, 1] / n_valid - mean * mean, 0.0)
    scale = gamma.astype(f32) * jax.lax.rsqrt(var + BN_EPS)       # (Cout,)
    shift = beta.astype(f32) - mean * scale

    y = y_flat[:, :Mp].reshape(Cout, N, Hp, Wp)
    y = y[:, :, 1:Hp - 1:stride, 1:Wp - 1:stride]                 # (Cout,N,Ho,Wo)
    y = jnp.maximum(y * scale[:, None, None, None]
                    + shift[:, None, None, None], 0.0)
    return jnp.transpose(y, (1, 0, 2, 3))                          # (N,Cout,Ho,Wo)


# ----------------------------------------------------------------------------
# Pure-JAX reference (includes the conv bias, to verify it is cancelled by BN)
# ----------------------------------------------------------------------------
def _reference(x_nchw, weight, bias, gamma, beta, stride=1):
    y = jax.lax.conv_general_dilated(
        x_nchw.astype(jnp.float32), weight.astype(jnp.float32),
        window_strides=(stride, stride), padding=((1, 1), (1, 1)),
        dimension_numbers=("NCHW", "OIHW", "NCHW"))
    y = y + bias.reshape(1, -1, 1, 1)
    mean = jnp.mean(y, axis=(0, 2, 3), keepdims=True)
    var = jnp.mean((y - mean) ** 2, axis=(0, 2, 3), keepdims=True)
    y = (y - mean) * jax.lax.rsqrt(var + BN_EPS)
    y = y * gamma.reshape(1, -1, 1, 1) + beta.reshape(1, -1, 1, 1)
    return jnp.maximum(y, 0.0)


if __name__ == "__main__":
    key = jax.random.PRNGKey(0)
    k_x, k_w, k_b, k_g, k_beta = jax.random.split(key, 5)

    N, Cin, Cout, H, W = 2, 4, 8, 16, 16

    x = jax.random.normal(k_x, (N, Cin, H, W), dtype=jnp.float32)
    weight = jax.random.normal(k_w, (Cout, Cin, 3, 3), dtype=jnp.float32) * 0.1
    bias = jax.random.normal(k_b, (Cout,), dtype=jnp.float32) * 0.1
    gamma = 1.0 + 0.1 * jax.random.normal(k_g, (Cout,), dtype=jnp.float32)
    beta = 0.1 * jax.random.normal(k_beta, (Cout,), dtype=jnp.float32)

    # stride=1 (default module config), auto tile size
    out = jax.block_until_ready(conv_bn_relu(x, weight, bias, gamma, beta, stride=1))
    ref = _reference(x, weight, bias, gamma, beta, stride=1)
    assert out.shape == (N, Cout, H, W), out.shape
    assert jnp.allclose(out, ref, atol=1e-3, rtol=1e-3), \
        float(jnp.max(jnp.abs(out - ref)))

    # stride=2 (module exposes stride as a constructor argument)
    out2 = jax.block_until_ready(conv_bn_relu(x, weight, bias, gamma, beta, stride=2))
    ref2 = _reference(x, weight, bias, gamma, beta, stride=2)
    assert out2.shape == (N, Cout, 8, 8), out2.shape
    assert jnp.allclose(out2, ref2, atol=1e-3, rtol=1e-3), \
        float(jnp.max(jnp.abs(out2 - ref2)))

    # forced small tile -> exercises the multi-tile grid, resident stats
    # accumulation across the "arbitrary" axis, and the 2-way "parallel" axis
    out3 = jax.block_until_ready(
        conv_bn_relu(x, weight, bias, gamma, beta, stride=1, tile_lanes=128))
    assert jnp.allclose(out3, ref, atol=1e-3, rtol=1e-3), \
        float(jnp.max(jnp.abs(out3 - ref)))

    print("KERNEL_OK")
</pallas_src>

<mosaic_0001>
module attributes {stable_mosaic.version = 11 : i64} {
  func.func @_conv_stats_kernel(%arg0: i32, %arg1: i32, %arg2: memref<4x512xf32, #tpu.memory_space<vmem>>, %arg3: memref<4x128xf32, #tpu.memory_space<vmem>>, %arg4: memref<8x36xf32, #tpu.memory_space<vmem>>, %arg5: memref<1x512xf32, #tpu.memory_space<vmem>>, %arg6: memref<8x512xf32, #tpu.memory_space<vmem>>, %arg7: memref<1x8x2xf32, #tpu.memory_space<vmem>>) attributes {dimension_semantics = [#tpu.dimension_semantics<parallel>, #tpu.dimension_semantics<arbitrary>], iteration_bounds = array<i64: 2, 1>, scalar_prefetch = 0 : i64, scratch_operands = 0 : i64, tpu.core_type = #tpu.core_type<tc>, window_params = [{transform_indices = @transform_0, window_bounds = array<i64: 4, 512>}, {transform_indices = @transform_1, window_bounds = array<i64: 4, 128>}, {pipeline_mode = #tpu.pipeline_mode<synchronous>, transform_indices = @transform_2, window_bounds = array<i64: 8, 36>}, {transform_indices = @transform_3, window_bounds = array<i64: 1, 512>}, {transform_indices = @transform_4, window_bounds = array<i64: 8, 512>}, {transform_indices = @transform_5, window_bounds = array<i64: 1, 8, 2>}]} {
    %c0 = arith.constant 0 : index
    %c0_0 = arith.constant 0 : index
    %0 = vector.load %arg2[%c0, %c0_0] : memref<4x512xf32, #tpu.memory_space<vmem>>, vector<4x512xf32>
    %c0_1 = arith.constant 0 : index
    %c0_2 = arith.constant 0 : index
    %1 = vector.load %arg3[%c0_1, %c0_2] : memref<4x128xf32, #tpu.memory_space<vmem>>, vector<4x128xf32>
    %2 = tpu.concatenate %0, %1 in 1 : vector<4x512xf32>, vector<4x128xf32> -> vector<4x640xf32>
    %3 = vector.extract_strided_slice %2 {offsets = [0, 0], sizes = [4, 512], strides = [1, 1]} : vector<4x640xf32> to vector<4x512xf32>
    %4 = vector.extract_strided_slice %2 {offsets = [0, 1], sizes = [4, 512], strides = [1, 1]} : vector<4x640xf32> to vector<4x512xf32>
    %5 = vector.extract_strided_slice %2 {offsets = [0, 2], sizes = [4, 512], strides = [1, 1]} : vector<4x640xf32> to vector<4x512xf32>
    %6 = vector.extract_strided_slice %2 {offsets = [0, 18], sizes = [4, 512], strides = [1, 1]} : vector<4x640xf32> to vector<4x512xf32>
    %7 = vector.extract_strided_slice %2 {offsets = [0, 19], sizes = [4, 512], strides = [1, 1]} : vector<4x640xf32> to vector<4x512xf32>
    %8 = vector.extract_strided_slice %2 {offsets = [0, 20], sizes = [4, 512], strides = [1, 1]} : vector<4x640xf32> to vector<4x512xf32>
    %9 = vector.extract_strided_slice %2 {offsets = [0, 36], sizes = [4, 512], strides = [1, 1]} : vector<4x640xf32> to vector<4x512xf32>
    %10 = vector.extract_strided_slice %2 {offsets = [0, 37], sizes = [4, 512], strides = [1, 1]} : vector<4x640xf32> to vector<4x512xf32>
    %11 = vector.extract_strided_slice %2 {offsets = [0, 38], sizes = [4, 512], strides = [1, 1]} : vector<4x640xf32> to vector<4x512xf32>
    %12 = tpu.concatenate %3, %4, %5, %6, %7, %8, %9, %10, %11 in 0 : vector<4x512xf32>, vector<4x512xf32>, vector<4x512xf32>, vector<4x512xf32>, vector<4x512xf32>, vector<4x512xf32>, vector<4x512xf32>, vector<4x512xf32>, vector<4x512xf32> -> vector<36x512xf32>
    %c0_3 = arith.constant 0 : index
    %c0_4 = arith.constant 0 : index
    %13 = vector.load %arg4[%c0_3, %c0_4] : memref<8x36xf32, #tpu.memory_space<vmem>>, vector<8x36xf32>
    %cst = arith.constant dense<0.000000e+00> : vector<8x512xf32>
    %14 = tpu.matmul %13, %12, %cst {dimension_numbers = #tpu.dot_dimension_numbers<[1], [0], [0], [1], [0, 0, 1, 1], [], []>} : vector<8x36xf32>, vector<36x512xf32>, vector<8x512xf32> -> vector<8x512xf32>
    %c0_5 = arith.constant 0 : index
    %c0_6 = arith.constant 0 : index
    %15 = vector.load %arg6[%c0_5, %c0_6] : memref<8x512xf32, #tpu.memory_space<vmem>>, vector<8x512xf32>
    tpu.vector_store %arg6[%c0_5, %c0_6], %14 {strides = array<i32>} : memref<8x512xf32, #tpu.memory_space<vmem>>, vector<8x512xf32>,
    %c0_i32 = arith.constant 0 : i32
    %16 = arith.cmpi eq, %arg1, %c0_i32 : i32
    %17 = arith.extui %16 : i1 to i32
    %c0_i32_7 = arith.constant 0 : i32
    %18 = arith.cmpi ne, %17, %c0_i32_7 : i32
    scf.if %18 {
      %cst_18 = arith.constant 0.000000e+00 : f32
      %32 = vector.broadcast %cst_18 : f32 to vector<1x8x2xf32>
      %c0_19 = arith.constant 0 : index
      %c0_20 = arith.constant 0 : index
      %c0_21 = arith.constant 0 : index
      %33 = vector.load %arg7[%c0_19, %c0_20, %c0_21] : memref<1x8x2xf32, #tpu.memory_space<vmem>>, vector<1x8x2xf32>
      tpu.vector_store %arg7[%c0_19, %c0_20, %c0_21], %32 {strides = array<i32>} : memref<1x8x2xf32, #tpu.memory_space<vmem>>, vector<1x8x2xf32>,
    } else {
    }
    %c0_8 = arith.constant 0 : index
    %c0_9 = arith.constant 0 : index
    %19 = vector.load %arg5[%c0_8, %c0_9] : memref<1x512xf32, #tpu.memory_space<vmem>>, vector<1x512xf32>
    %20 = vector.broadcast %19 : vector<1x512xf32> to vector<8x512xf32>
    %21 = arith.mulf %14, %20 : vector<8x512xf32>
    %cst_10 = arith.constant dense<0.000000e+00> : vector<8xf32>
    %22 = vector.multi_reduction <add>, %21, %cst_10 [1] : vector<8x512xf32> to vector<8xf32>
    %23 = vector.shape_cast %22 : vector<8xf32> to vector<8x1xf32>
    %24 = arith.mulf %21, %14 : vector<8x512xf32>
    %cst_11 = arith.constant dense<0.000000e+00> : vector<8xf32>
    %25 = vector.multi_reduction <add>, %24, %cst_11 [1] : vector<8x512xf32> to vector<8xf32>
    %26 = vector.shape_cast %25 : vector<8xf32> to vector<8x1xf32>
    %c0_12 = arith.constant 0 : index
    %c0_13 = arith.constant 0 : index
    %c0_14 = arith.constant 0 : index
    %27 = vector.load %arg7[%c0_12, %c0_13, %c0_14] : memref<1x8x2xf32, #tpu.memory_space<vmem>>, vector<1x8x2xf32>
    %28 = tpu.concatenate %23, %26 in 1 : vector<8x1xf32>, vector<8x1xf32> -> vector<8x2xf32>
    %29 = vector.shape_cast %28 : vector<8x2xf32> to vector<1x8x2xf32>
    %30 = arith.addf %27, %29 : vector<1x8x2xf32>
    %c0_15 = arith.constant 0 : index
    %c0_16 = arith.constant 0 : index
    %c0_17 = arith.constant 0 : index
    %31 = vector.load %arg7[%c0_15, %c0_16, %c0_17] : memref<1x8x2xf32, #tpu.memory_space<vmem>>, vector<1x8x2xf32>
    tpu.vector_store %arg7[%c0_15, %c0_16, %c0_17], %30 {strides = array<i32>} : memref<1x8x2xf32, #tpu.memory_space<vmem>>, vector<1x8x2xf32>,
    return
  }
  func.func @transform_0(%arg0: i32, %arg1: i32) -> (i32, i32) {
    %c1_i32 = arith.constant 1 : i32
    %0 = arith.muli %arg0, %c1_i32 : i32
    %1 = arith.addi %0, %arg1 : i32
    %c0_i32 = arith.constant 0 : i32
    %c0_i32_0 = arith.constant 0 : i32
    return %c0_i32, %1 : i32, i32
  }
  func.func @transform_1(%arg0: i32, %arg1: i32) -> (i32, i32) {
    %c1_i32 = arith.constant 1 : i32
    %0 = arith.muli %arg0, %c1_i32 : i32
    %1 = arith.addi %0, %arg1 : i32
    %c1_i32_0 = arith.constant 1 : i32
    %2 = arith.addi %1, %c1_i32_0 : i32
    %c4_i32 = arith.constant 4 : i32
    %3 = arith.muli %2, %c4_i32 : i32
    %c0_i32 = arith.constant 0 : i32
    %c0_i32_1 = arith.constant 0 : i32
    return %c0_i32, %3 : i32, i32
  }
  func.func @transform_2(%arg0: i32, %arg1: i32) -> (i32, i32) {
    %c0_i32 = arith.constant 0 : i32
    %c0_i32_0 = arith.constant 0 : i32
    %c0_i32_1 = arith.constant 0 : i32
    return %c0_i32, %c0_i32_0 : i32, i32
  }
  func.func @transform_3(%arg0: i32, %arg1: i32) -> (i32, i32) {
    %c1_i32 = arith.constant 1 : i32
    %0 = arith.muli %arg0, %c1_i32 : i32
    %1 = arith.addi %0, %arg1 : i32
    %c0_i32 = arith.constant 0 : i32
    %c0_i32_0 = arith.constant 0 : i32
    return %c0_i32, %1 : i32, i32
  }
  func.func @transform_4(%arg0: i32, %arg1: i32) -> (i32, i32) {
    %c1_i32 = arith.constant 1 : i32
    %0 = arith.muli %arg0, %c1_i32 : i32
    %1 = arith.addi %0, %arg1 : i32
    %c0_i32 = arith.constant 0 : i32
    %c0_i32_0 = arith.constant 0 : i32
    return %c0_i32, %1 : i32, i32
  }
  func.func @transform_5(%arg0: i32, %arg1: i32) -> (i32, i32, i32) {
    %c0_i32 = arith.constant 0 : i32
    %c0_i32_0 = arith.constant 0 : i32
    %c0_i32_1 = arith.constant 0 : i32
    return %arg0, %c0_i32, %c0_i32_0 : i32, i32, i32
  }
}

</mosaic_0001>

<bundles_post_ra>
// kernel: conv_bn_relu.1
= control target key start
LH: loop header
LB: loop body
LE: loop exit
PB: predicated region body
PF: predicated region fallthrough
CT: control target
= control target key end

     0   :  { %s965_s18 = smov 0   ;;  %s967_s19 = smov 0   ;;  %s1168_s0 = inlined_call_operand.vmem [shape: f32[4,1536], index: 0, kind: input, shape index: {}, may-alias: {0,1}]   ;;  %s1169_s1 = inlined_call_operand.vmem [shape: f32[4,1536], index: 1, kind: input, shape index: {}, may-alias: {0,1}]   ;;  %s1170_s2 = inlined_call_operand.vmem [shape: f32[8,36], index: 2, kind: input, shape index: {}]   ;;  %s1171_s3 = inlined_call_operand.vmem [shape: f32[1,1024], index: 3, kind: input, shape index: {}]   ;;  %s1172_s4 = inlined_call_operand.vmem [shape: f32[8,1024], index: 4, kind: output, shape index: {0}]   ;;  %s1173_s5 = inlined_call_operand.vmem [shape: f32[2,8,2], index: 5, kind: output, shape index: {1}]  }
   0x1   :  { %s969_s20 = smov 0  }
   0x2 LB: > { %s28_s21 = sadd.s32 1, %s920_s19  ;;  %p844_p0 = scmp.ge.s32.totalorder %s924_s20, 1  ;;  %s924_s20 = sphi %s969_s20, %s16_s20   ;;  %s920_s19 = sphi %s967_s19, %s1175_s19   ;;  %s916_s18 = sphi %s965_s18, %s1174_s18  }
   0x3   : > { %p30_p1 = scmp.ge.s32.totalorder %s28_s21, 2  ;;  %p244_p2 = scmp.lt.s32.totalorder %s924_s20, 3 }
   0x5   : > { %s1177_s21 = smov (%p30_p1, %s28_s21), 0  ;;  %p245_p3 = pnand %p844_p0, %p244_p2 }
   0x6   : > { %s986_s22 = sshll.u32 (!%p245_p3), %s916_s18, 2  ;;  %s926_s28 = smov (!%p245_p3), 92  }
   0x7   : > { %248 = sbr.rel (%p245_p3) target bundleno = 555 (0x22b), region = 36  ;;  %p292_p4 = scmp.lt.s32.totalorder (!%p245_p3), %s986_s22, 11 }
   0x8   : > { %s927_s29 = smov (!%p245_p3), 90   ;;  %s928_s30 = smov (!%p245_p3), 91  }
   0x9   : > { %s866_s6 = sadd.s32 (!%p245_p3), 4, %s986_s22  ;;  %s929_s7 = smov (!%p245_p3), 109  }
   0xa   : > { %p301_p5 = scmp.lt.s32.totalorder (!%p245_p3), %s866_s6, 11  ;;  %s930_s8 = smov (!%p245_p3), 108  }
   0xb   : > { %s931_s13 = smov (!%p245_p3), 126   ;;  %s932_s14 = smov (!%p245_p3), 110  }
   0xc   : > { %s293_s23 = scalar_select %p292_p4, %s986_s22, 11  ;;  %v934_v8 = vmov 0.0   ;;  %vm670_vm0 = vcmask 15360   ;;  %vm485_vm1 = vcmask 736256   ;;  %vm490_vm2 = vcmask 1043456  }
   0xd   : > { %s1179_s6 = smov (!%p301_p5, %s866_s6), 11  ;;  %s933_s15 = smov 127   ;;  %584 = vmatprep.mubr.f32.mxu0 %v934_v8  ;;  %655 = vmatprep.mubr.f32.mxu1 %v934_v8  ;;  %vm466_vm3 = vcmask 744448   ;;  %vm447_vm4 = vcmask 752640   ;;  %vm409_vm5 = vcmask 891904   ;;  %vm428_vm6 = vcmask 883712  }
   0xe   : > { %s846_s24 = sshll.u32 %s293_s23, 2  ;;  %s848_s9 = sshll.u32 %s1179_s6, 2  ;;  %vm371_vm7 = vcmask 1031168   ;;  %vm390_vm8 = vcmask 900096   ;;  %vm352_vm9 = vcmask 1039360   ;;  %vm508_vm10 = vcmask 293888  }
   0xf   : > { %s295_s27 = scalar_lea.vmem %s1168_s0, %s846_s24  ;;  %s304_s12 = scalar_lea.vmem %s1169_s1, %s848_s9  ;;  %vm713_vm11 = vcmask 7168  }
  0x10   : > { %v993_v0 = vld [vmem:[%s295_s27 + $0x8] sm:$0xff]  ;;  %v995_v1 = vld [vmem:[%s295_s27] sm:$0xff]  ;;  %p323_p6 = scmp.lt.s32.totalorder %s916_s18, 1  ;;  %p310_p7 = scmp.lt.s32.totalorder %s986_s22, 7 }
  0x11   : > { %441 = vrot.lane.b32.xlu1 %v993_v0, %s926_s28  ;;  %v1001_v2 = vcombine.high %v995_v1, %v995_v1  ;;  %479 = vrot.lane.b32.xlu0 %v993_v0, %s927_s29  ;;  %v339_v3 = vrot.slane %v993_v0, 4  ;;  %v337_v4 = vrot.slane %v995_v1, 4  ;;  %v1028_v5 = vcombine.high %v993_v0, %v993_v0  ;;  %v329_v6 = vld [vmem:[%s304_s12] sm:$0xf] }
  0x12   : > { %v341_v7 = vrot.slane %v329_v6, 4  ;;  %s1181_s18 = smov (!%p323_p6, %s916_s18), 1  ;;  %s1183_s22 = smov (!%p310_p7, %s986_s22), 7 }
  0x13   : > { %s852_s16 = sshll.u32 %s1181_s18, 3  ;;  %s851_s26 = sshll.u32 %s1183_s22, 3 }
  0x14   : > { %s1067_s24 = scalar_lea.vmem %s1173_s5, %s852_s16 }
  0x15   : > { %439 = vrot.lane.b32.xlu1 %v1001_v2, %s926_s28  ;;  %477 = vrot.lane.b32.xlu0 %v1001_v2, %s927_s29  ;;  %671 = vst.msk [vmem:[%s1067_s24] sm:$0xff] %vm670_vm0, %v934_v8 }
  0x19   : > { %460 = vrot.lane.b32.xlu1 %v339_v3, %s928_s30  ;;  %458 = vrot.lane.b32.xlu0 %v1001_v2, %s928_s30 }
  0x1d   : > { %437 = vrot.lane.b32.xlu1 %v995_v1, %s926_s28  ;;  %475 = vrot.lane.b32.xlu0 %v995_v1, %s927_s29 }
  0x21   : > { %401 = vrot.lane.b32.xlu1 %v1001_v2, %s929_s7  ;;  %456 = vrot.lane.b32.xlu0 %v337_v4, %s928_s30 }
  0x25   : > { %420 = vrot.lane.b32.xlu1 %v1001_v2, %s930_s8  ;;  %403 = vrot.lane.b32.xlu0 %v993_v0, %s929_s7 }
  0x29   : > { %399 = vrot.lane.b32.xlu1 %v995_v1, %s929_s7  ;;  %422 = vrot.lane.b32.xlu0 %v339_v3, %s930_s8 }
  0x2d   : > { %481 = vrot.lane.b32.xlu1 %v1028_v5, %s927_s29  ;;  %418 = vrot.lane.b32.xlu0 %v337_v4, %s930_s8 }
  0x31   : > { %363 = vrot.lane.b32.xlu1 %v1001_v2, %s931_s13  ;;  %483 = vrot.lane.b32.xlu0 %v329_v6, %s927_s29  ;;  %s312_s29 = scalar_lea.vmem %s1171_s3, %s1183_s22 }
  0x35   : > { %382 = vrot.lane.b32.xlu1 %v1001_v2, %s932_s14  ;;  %365 = vrot.lane.b32.xlu0 %v993_v0, %s931_s13 }
  0x39   : > { %443 = vrot.lane.b32.xlu1 %v1028_v5, %s926_s28  ;;  %384 = vrot.lane.b32.xlu0 %v339_v3, %s932_s14 }
  0x3d   : > { %462 = vrot.lane.b32.xlu1 %v1028_v5, %s928_s30  ;;  %445 = vrot.lane.b32.xlu0 %v329_v6, %s926_s28 }
  0x41   : > { %361 = vrot.lane.b32.xlu1 %v995_v1, %s931_s13  ;;  %464 = vrot.lane.b32.xlu0 %v341_v7, %s928_s30 }
  0x45   : > { %344 = vrot.lane.b32.xlu1 %v1001_v2, %s933_s15  ;;  %380 = vrot.lane.b32.xlu0 %v337_v4, %s932_s14 }
  0x49   : > { %405 = vrot.lane.b32.xlu1 %v1028_v5, %s929_s7  ;;  %346 = vrot.lane.b32.xlu0 %v339_v3, %s933_s15 }
  0x4d   : > { %424 = vrot.lane.b32.xlu1 %v1028_v5, %s930_s8  ;;  %407 = vrot.lane.b32.xlu0 %v329_v6, %s929_s7  ;;  %s320_s7 = scalar_lea.vmem %s1172_s4, %s851_s26 }
  0x51   : > { %342 = vrot.lane.b32.xlu1 %v337_v4, %s933_s15  ;;  %426 = vrot.lane.b32.xlu0 %v341_v7, %s930_s8 }
  0x55   : > { %369 = vrot.lane.b32.xlu1 %v329_v6, %s931_s13  ;;  %367 = vrot.lane.b32.xlu0 %v1028_v5, %s931_s13 }
  0x59   : > { %388 = vrot.lane.b32.xlu1 %v341_v7, %s932_s14  ;;  %386 = vrot.lane.b32.xlu0 %v1028_v5, %s932_s14 }
  0x5d   : > { %350 = vrot.lane.b32.xlu1 %v341_v7, %s933_s15  ;;  %348 = vrot.lane.b32.xlu0 %v1028_v5, %s933_s15 }
  0x83   : > { %v1079_v9 = vpop.permute.xlu1 %441  ;;  %v480_v10 = vpop.permute.xlu0 %479 }
  0x87   : > { %v440_v11 = vpop.permute.xlu1 %439  ;;  %v478_v12 = vpop.permute.xlu0 %477 }
  0x88   : > { %v487_v13 = vsel %vm485_vm1, %v478_v12, %v480_v10  ;;  %v449_v19 = vsel %vm447_vm4, %v440_v11, %v1079_v9 }
  0x89   : > { %853 = vmatprep.subr.msk.mxu0 %vm490_vm2, %v487_v13 }
  0x8b   : > { %v461_v14 = vpop.permute.xlu1 %460  ;;  %v459_v15 = vpop.permute.xlu0 %458 }
  0x8c   : > { %v468_v16 = vsel %vm466_vm3, %v459_v15, %v461_v14 }
  0x8d   : > { %v504_v21 = vsel %vm490_vm2, %v449_v19, %v468_v16 }
  0x8f   : > { %v438_v17 = vpop.permute.xlu1 %437  ;;  %v476_v18 = vpop.permute.xlu0 %475 }
  0x90   : > { %v486_v20 = vsel %vm485_vm1, %v476_v18, %v478_v12  ;;  %v448_v24 = vsel %vm447_vm4, %v438_v17, %v440_v11  ;;  %v507_v17 = vld [vmem:[%s1170_s2] sm:$0xff] }
  0x91   : > { %854 = vmatpush1.msk.msra.mxu0 %vm490_vm2, %v486_v20 }
  0x92   : > { %544 = vmatprep.subr.mxu0 %v504_v21 }
  0x93   : > { %v402_v22 = vpop.permute.xlu1 %401  ;;  %v457_v23 = vpop.permute.xlu0 %456 }
  0x94   : > { %v467_v25 = vsel %vm466_vm3, %v457_v23, %v459_v15 }
  0x95   : > { %v503_v26 = vsel %vm490_vm2, %v448_v24, %v467_v25 }
  0x96   : > { %545 = vmatpush1.msra.mxu0 %v503_v26 }
  0x97   : > { %v421_v27 = vpop.permute.xlu1 %420  ;;  %v1092_v28 = vpop.permute.xlu0 %403 }
  0x98   : > { %v411_v31 = vsel %vm409_vm5, %v402_v22, %v1092_v28 }
  0x9b   : > { %v400_v29 = vpop.permute.xlu1 %399  ;;  %v423_v30 = vpop.permute.xlu0 %422 }
  0x9c   : > { %v430_v32 = vsel %vm428_vm6, %v421_v27, %v423_v30  ;;  %v410_v36 = vsel %vm409_vm5, %v400_v29, %v402_v22 }
  0x9d   : > { %v500_v33 = vsel %vm490_vm2, %v411_v31, %v430_v32 }
  0x9e   : > { %546 = vmatprep.subr.mxu0 %v500_v33 }
  0x9f   : > { %v482_v34 = vpop.permute.xlu1 %481  ;;  %v419_v35 = vpop.permute.xlu0 %418 }
  0xa0   : > { %v429_v37 = vsel %vm428_vm6, %v419_v35, %v421_v27  ;;  %v488_v42 = vsel %vm485_vm1, %v480_v10, %v482_v34 }
  0xa1   : > { %v499_v38 = vsel %vm490_vm2, %v410_v36, %v429_v37  ;;  %v674_v36 = vlaneseq }
  0xa2   : > { %547 = vmatpush1.msra.mxu0 %v499_v38 }
  0xa3   : > { %v364_v39 = vpop.permute.xlu1 %363  ;;  %v484_v40 = vpop.permute.xlu0 %483  ;;  %v675_v37 = vshrl.u32 %v674_v36, 7 }
  0xa4   : > { %v489_v41 = vsel %vm485_vm1, %v482_v34, %v484_v40 }
  0xa5   : > { %856 = vmatprep.subr.msk.mxu1 %vm490_vm2, %v489_v41  ;;  %v676_v38 = vsub.s32 0, %v675_v37 }
  0xa6   : > { %857 = vmatpush1.msk.msra.mxu1 %vm490_vm2, %v488_v42 }
  0xa7   : > { %v383_v43 = vpop.permute.xlu1 %382  ;;  %v366_v44 = vpop.permute.xlu0 %365 }
  0xa8   : > { %v373_v47 = vsel %vm371_vm7, %v364_v39, %v366_v44 }
  0xab   : > { %v444_v45 = vpop.permute.xlu1 %443  ;;  %v385_v46 = vpop.permute.xlu0 %384 }
  0xac   : > { %v392_v48 = vsel %vm390_vm8, %v383_v43, %v385_v46  ;;  %v450_v57 = vsel %vm447_vm4, %v1079_v9, %v444_v45 }
  0xad   : > { %v496_v49 = vsel %vm490_vm2, %v373_v47, %v392_v48 }
  0xae   : > { %548 = vmatprep.subr.mxu0 %v496_v49 }
  0xaf   : > { %v463_v50 = vpop.permute.xlu1 %462  ;;  %v446_v51 = vpop.permute.xlu0 %445 }
  0xb0   : > { %v469_v52 = vsel %vm466_vm3, %v461_v14, %v463_v50  ;;  %v451_v55 = vsel %vm447_vm4, %v444_v45, %v446_v51 }
  0xb1   : > { %v505_v59 = vsel %vm490_vm2, %v450_v57, %v469_v52 }
  0xb3   : > { %v362_v53 = vpop.permute.xlu1 %361  ;;  %v465_v54 = vpop.permute.xlu0 %464 }
  0xb4   : > { %v470_v56 = vsel %vm466_vm3, %v463_v50, %v465_v54  ;;  %v372_v62 = vsel %vm371_vm7, %v362_v53, %v364_v39  ;;  %v672_v39 = vld [vmem:[%s312_s29] sm:$0xf] }
  0xb5   : > { %v506_v58 = vsel %vm490_vm2, %v451_v55, %v470_v56  ;;  %v677_v41 = vrot.slane %v672_v39, %v676_v38 }
  0xb6   : > { %615 = vmatprep.subr.mxu1 %v506_v58 }
  0xb7   : > { %v345_v60 = vpop.permute.xlu1 %344  ;;  %616 = vmatpush1.msra.mxu1 %v505_v59  ;;  %v381_v61 = vpop.permute.xlu0 %380 }
  0xb8   : > { %v391_v63 = vsel %vm390_vm8, %v381_v61, %v383_v43  ;;  %v684_v43 = vsub.s32 2, %v675_v37 }
  0xb9   : > { %v495_v3 = vsel %vm490_vm2, %v372_v62, %v391_v63  ;;  %v712_v63 = vld [vmem:[%s1067_s24] sm:$0xff] }
  0xba   : > { %549 = vmatpush1.msra.mxu0 %v495_v3  ;;  %v685_v47 = vrot.slane %v672_v39, %v684_v43 }
  0xbb   : > { %v406_v4 = vpop.permute.xlu1 %405  ;;  %v347_v6 = vpop.permute.xlu0 %346 }
  0xbc   : > { %v354_v7 = vsel %vm352_vm9, %v345_v60, %v347_v6 }
  0xbd   : > { %v492_v8 = vsel %vm490_vm2, %v1001_v2, %v354_v7  ;;  %v412_v2 = vsel %vm409_vm5, %v1092_v28, %v406_v4 }
  0xbe   : > { %550 = vmatprep.subr.mxu0 %v492_v8 }
  0xbf   : > { %v425_v9 = vpop.permute.xlu1 %424  ;;  %v408_v10 = vpop.permute.xlu0 %407 }
  0xc0   : > { %v431_v11 = vsel %vm428_vm6, %v423_v30, %v425_v9  ;;  %v413_v14 = vsel %vm409_vm5, %v406_v4, %v408_v10 }
  0xc1   : > { %v501_v20 = vsel %vm490_vm2, %v412_v2, %v431_v11 }
  0xc3   : > { %v343_v12 = vpop.permute.xlu1 %342  ;;  %v427_v13 = vpop.permute.xlu0 %426 }
  0xc4   : > { %v353_v15 = vsel %vm352_vm9, %v343_v12, %v345_v60  ;;  %v432_v16 = vsel %vm428_vm6, %v425_v9, %v427_v13 }
  0xc5   : > { %v491_v18 = vsel %vm490_vm2, %v995_v1, %v353_v15  ;;  %v502_v19 = vsel %vm490_vm2, %v413_v14, %v432_v16 }
  0xc6   : > { %551 = vmatpush1.msra.mxu0 %v491_v18  ;;  %617 = vmatprep.subr.mxu1 %v502_v19 }
  0xc7   : > { %v370_v21 = vpop.permute.xlu1 %369  ;;  %618 = vmatpush1.msra.mxu1 %v501_v20  ;;  %v368_v22 = vpop.permute.xlu0 %367  ;;  %855 = vmatmul.mubr.msk.f32.vlgmr.msra.gmra.mxu0 %vm508_vm10, %v507_v17 }
  0xc8   : > { %v374_v25 = vsel %vm371_vm7, %v366_v44, %v368_v22  ;;  %v375_v26 = vsel %vm371_vm7, %v368_v22, %v370_v21 }
  0xcb   : > { %v389_v23 = vpop.permute.xlu1 %388  ;;  %v387_v24 = vpop.permute.xlu0 %386 }
  0xcc   : > { %v393_v1 = vsel %vm390_vm8, %v385_v46, %v387_v24  ;;  %v394_v27 = vsel %vm390_vm8, %v387_v24, %v389_v23  ;;  %v688_v46 = vsub.s32 3, %v675_v37 }
  0xcd   : > { %v498_v28 = vsel %vm490_vm2, %v375_v26, %v394_v27  ;;  %v497_v29 = vsel %vm490_vm2, %v374_v25, %v393_v1 }
  0xce   : > { %619 = vmatprep.subr.mxu1 %v498_v28  ;;  %v689_v50 = vrot.slane %v672_v39, %v688_v46 }
  0xcf   : > { %v351_v30 = vpop.permute.xlu1 %350  ;;  %620 = vmatpush1.msra.mxu1 %v497_v29  ;;  %v349_v31 = vpop.permute.xlu0 %348 }
  0xd0   : > { %v355_v32 = vsel %vm352_vm9, %v347_v6, %v349_v31  ;;  %v356_v33 = vsel %vm352_vm9, %v349_v31, %v351_v30 }
  0xd1   : > { %v494_v34 = vsel %vm490_vm2, %v1028_v5, %v356_v33  ;;  %v493_v35 = vsel %vm490_vm2, %v993_v0, %v355_v32  ;;  %v680_v0 = vsub.s32 1, %v675_v37 }
  0xd2   : > { %621 = vmatprep.subr.mxu1 %v494_v34 }
  0xd3   : > { %622 = vmatpush1.msra.mxu1 %v493_v35  ;;  %v681_v42 = vrot.slane %v672_v39, %v680_v0 }
  0xd4   : > { %858 = vmatmul.mubr.msk.f32.vlgmr.msra.gmra.mxu1 %vm508_vm10, %v507_v17 }
 0x187   : > { %v586_v5 = vpop.f32.mrf.mxu0 }
 0x188   : > { %662 = vst [vmem:[%s320_s7] sm:$0xff] %v586_v5  ;;  %v694_v44 = vmul.f32 %v677_v41, %v586_v5 }
 0x189   : > { %v588_v40 = vpop.f32.mrf.mxu0 }
 0x18a   : > { %663 = vst [vmem:[%s320_s7 + $0x8] sm:$0xff] %v588_v40  ;;  %v695_v45 = vmul.f32 %v681_v42, %v588_v40  ;;  %v703_v48 = vmul.f32 %v694_v44, %v586_v5 }
 0x18c   : > { %v704_v49 = vmul.f32 %v695_v45, %v588_v40  ;;  %v698_v52 = vadd.f32 %v695_v45, %v694_v44 }
 0x18e   : > { %v707_v55 = vadd.f32 %v704_v49, %v703_v48 }
 0x194   : > { %v657_v51 = vpop.f32.mrf.mxu1 }
 0x195   : > { %664 = vst [vmem:[%s320_s7 + $0x10] sm:$0xff] %v657_v51  ;;  %v696_v53 = vmul.f32 %v685_v47, %v657_v51 }
 0x196   : > { %v659_v54 = vpop.f32.mrf.mxu1 }
 0x197   : > { %v705_v56 = vmul.f32 %v696_v53, %v657_v51  ;;  %665 = vst [vmem:[%s320_s7 + $0x18] sm:$0xff] %v659_v54  ;;  %v697_v57 = vmul.f32 %v689_v50, %v659_v54  ;;  %v699_v58 = vadd.f32 %v698_v52, %v696_v53 }
 0x199   : > { %v706_v59 = vmul.f32 %v697_v57, %v659_v54  ;;  %v700_v60 = vadd.f32 %v699_v58, %v697_v57  ;;  %v708_v61 = vadd.f32 %v707_v55, %v705_v56 }
 0x19b   : > { %701 = vadd.xlane.f32.xlu0 %v700_v60  ;;  %v709_v62 = vadd.f32 %v708_v61, %v706_v59 }
 0x19d   : > { %710 = vadd.xlane.f32.xlu1 %v709_v62 }
 0x224   : > { %v702_v3 = vpop.xlane.xlu0 %701 }
 0x226   : > { %v711_v4 = vpop.xlane.xlu1 %710 }
 0x227   : > { %v714_v6 = vsel %vm713_vm11, %v702_v3, %v711_v4 }
 0x228   : > { %v715_v7 = vadd.f32 %v714_v6, %v712_v63 }
 0x22a   : > { %717 = vst.msk [vmem:[%s1067_s24] sm:$0xff] %vm670_vm0, %v715_v7 }
 0x22b PF: > { %s16_s20 = sadd.s32 1, %s924_s20   ;;  %s1174_s18 = smov %s920_s19 }
 0x22c   : > { %p13_p8 = scmp.ge.s32.totalorder %s16_s20, 4   ;;  %s1175_s19 = smov %s1177_s21 }
 0x22e   :  { %15 = sbr.rel (!%p13_p8) target bundleno = 2 (0x2), region = 88 }

</bundles_post_ra>
